<compile_context>
chip_gen: v7x
topology: tpu7x:2x2x1
jax: 0.10.0
libtpu: 0.0.40
codegen_flags: <defaults>
</compile_context>

<pallas_src>
import math

import jax
import jax.numpy as jnp
from jax.experimental import pallas as pl
from jax.experimental.pallas import tpu as pltpu


_SQRT_2_OVER_PI = 0.7978845608028654


def _gelu_tanh(x):
    # tanh-approximation GELU (PyTorch F.gelu(approximate='tanh')); tanh maps
    # to the EUP slot on TPU so it co-issues with MXU/VPU work.
    # TODO(synk): if the original Dense uses PyTorch's exact (erf) GELU this
    # differs by up to ~1e-3 per element.
    return 0.5 * x * (1.0 + jnp.tanh(_SQRT_2_OVER_PI * (x + 0.044715 * x * x * x)))


def _round_up(x, m):
    return ((x + m - 1) // m) * m


def _orbital_kernel(x_ref, w1_ref, b1_ref, w2_ref, b2_ref, o_ref):
    """Fused gelu(x @ W1 + b1) @ W2 + b2 for one tile of rows.

    x / W1 / W2 are bf16 (MXU-native rate); both matmuls accumulate in f32
    via preferred_element_type, biases and the GELU stay in f32.
    """
    x = x_ref[...]                                                    # (TB, D) bf16
    h = _gelu_tanh(
        jnp.dot(x, w1_ref[...], preferred_element_type=jnp.float32)
        + b1_ref[...])                                                # (TB, H) f32
    h = h.astype(jnp.bfloat16)                                        # bf16 for 2nd MXU pass
    o_ref[...] = (
        jnp.dot(h, w2_ref[...], preferred_element_type=jnp.float32)
        + b2_ref[...]).astype(o_ref.dtype)                            # (TB, O) f32


def prepare_params(params):
    """One-time (outside the per-call path) lane padding + bf16 cast of the
    weights; biases stay f32."""
    D, H = params["w1"].shape
    _, O = params["w2"].shape
    D_pad, H_pad, O_pad = (_round_up(d, 128) for d in (D, H, O))

    w1 = jnp.pad(params["w1"], ((0, D_pad - D), (0, H_pad - H))).astype(jnp.bfloat16)
    b1 = jnp.pad(params["b1"].reshape(1, H).astype(jnp.float32),
                 ((0, 0), (0, H_pad - H)))
    w2 = jnp.pad(params["w2"], ((0, H_pad - H), (0, O_pad - O))).astype(jnp.bfloat16)
    b2 = jnp.pad(params["b2"].reshape(1, O).astype(jnp.float32),
                 ((0, 0), (0, O_pad - O)))
    return {"w1": w1, "b1": b1, "w2": w2, "b2": b2, "dims": (D, H, O)}


def orbital_network_forward(features, electron_coords, prepared, *, block_rows=512):
    """Pallas equivalent of OrbitalNetwork.forward (envelope=None path).

    features:        (B, n_electrons, d_model) float32
    electron_coords: (B, n_electrons, 3)       float32 (only needed by the
                                               unimplemented envelope path)
    prepared:        output of prepare_params(params)
    returns:         (B, n_electrons, n_orbitals) float32
    """
    del electron_coords  # only the (unimplemented) envelope path needs these

    D, H, O = prepared["dims"]
    B, N, d_model = features.shape
    assert d_model == D
    rows = B * N

    D_pad, H_pad = prepared["w1"].shape
    O_pad = prepared["w2"].shape[1]

    # Adaptive row tile: bound padding waste, keep >=2 (even) grid steps when
    # the problem is big enough so the BlockSpec pipeline can prefetch/writeback
    # under compute and both v7x TensorCores get steps; multiple of 8 sublanes.
    n_steps = max(pl.cdiv(rows, block_rows), min(4, pl.cdiv(rows, 8)))
    if n_steps > 1 and n_steps % 2:
        n_steps += 1
    TB = _round_up(pl.cdiv(rows, n_steps), 8)
    rows_pad = _round_up(rows, TB)
    grid = (rows_pad // TB,)

    x = features.reshape(rows, D).astype(jnp.bfloat16)
    if rows_pad != rows or D_pad != D:
        x = jnp.pad(x, ((0, rows_pad - rows), (0, D_pad - D)))

    # Explicit VMEM budget: bf16 x / f32 out tiles double-buffered by the
    # pipeline, weights & biases single-buffered (constant index_map +
    # Buffered(1)), plus the fused f32 intermediate h.
    vmem_bytes = (2 * TB * D_pad * 2                        # x tiles (bf16, 2 bufs)
                  + 2 * TB * O_pad * 4                      # out tiles (f32, 2 bufs)
                  + (D_pad * H_pad + H_pad * O_pad) * 2     # weights (bf16, 1 buf)
                  + (H_pad + O_pad) * 4                     # biases (f32)
                  + TB * H_pad * 4)                         # fused intermediate h
    vmem_limit = min(max(int(vmem_bytes * 1.5) + (2 << 20), 16 << 20), 64 << 20)
    # TODO(synk): for d_model/n_orbitals so large that the resident bf16
    # weights alone exceed ~half of v7x's 64 MiB VMEM, tile the weights with an
    # extra grid axis instead of keeping both matrices fully resident.

    cost = pl.CostEstimate(
        flops=2 * rows_pad * (D_pad * H_pad + H_pad * O_pad),
        transcendentals=rows_pad * H_pad,
        bytes_accessed=(rows_pad * D_pad * 2 + D_pad * H_pad * 2
                        + H_pad * O_pad * 2 + (H_pad + O_pad) * 4
                        + rows_pad * O_pad * 4),
    )

    def resident(shape):
        # Constant block -> never re-DMA'd; single buffer to save VMEM.
        return pl.BlockSpec(shape, lambda i: (0, 0), pipeline_mode=pl.Buffered(1))

    out = pl.pallas_call(
        _orbital_kernel,
        out_shape=jax.ShapeDtypeStruct((rows_pad, O_pad), jnp.float32),
        grid=grid,
        in_specs=[
            pl.BlockSpec((TB, D_pad), lambda i: (i, 0)),   # activations: row-tiled
            resident((D_pad, H_pad)),                      # W1 (bf16, VMEM-resident)
            resident((1, H_pad)),                          # b1 (f32)
            resident((H_pad, O_pad)),                      # W2 (bf16, VMEM-resident)
            resident((1, O_pad)),                          # b2 (f32)
        ],
        out_specs=pl.BlockSpec((TB, O_pad), lambda i: (i, 0)),
        compiler_params=pltpu.CompilerParams(
            dimension_semantics=("parallel",),
            vmem_limit_bytes=vmem_limit),
        cost_estimate=cost,
    )(x, prepared["w1"], prepared["b1"], prepared["w2"], prepared["b2"])

    return out[:rows, :O].reshape(B, N, O)


def init_params(key, d_model, n_orbitals):
    """PyTorch-Linear-like uniform fan-in init; weights stored (in, out)."""
    ks = jax.random.split(key, 4)

    def lin(kw, kb, fan_in, fan_out):
        bound = 1.0 / math.sqrt(fan_in)
        w = jax.random.uniform(kw, (fan_in, fan_out), jnp.float32, -bound, bound)
        b = jax.random.uniform(kb, (1, fan_out), jnp.float32, -bound, bound)
        return w, b

    w1, b1 = lin(ks[0], ks[1], d_model, d_model)
    w2, b2 = lin(ks[2], ks[3], d_model, n_orbitals)
    return {"w1": w1, "b1": b1, "w2": w2, "b2": b2}


def _reference_forward_bf16(features, params):
    """Mirrors the kernel's bf16-operand / f32-accumulate numerics."""
    B, N, D = features.shape
    x = features.reshape(B * N, D).astype(jnp.bfloat16)
    h = _gelu_tanh(
        jnp.dot(x, params["w1"].astype(jnp.bfloat16),
                preferred_element_type=jnp.float32) + params["b1"])
    h = h.astype(jnp.bfloat16)
    out = jnp.dot(h, params["w2"].astype(jnp.bfloat16),
                  preferred_element_type=jnp.float32) + params["b2"]
    return out.reshape(B, N, -1)


def _reference_forward_f32(features, params):
    B, N, D = features.shape
    x = features.reshape(B * N, D)
    h = _gelu_tanh(x @ params["w1"] + params["b1"])
    out = h @ params["w2"] + params["b2"]
    return out.reshape(B, N, -1)


if __name__ == "__main__":
    batch = 2
    n_electrons = 4
    d_model = 32
    n_orbitals = 4
    n_atoms = 2

    key = jax.random.PRNGKey(0)
    k_params, k_feat, k_coords = jax.random.split(key, 3)

    params = init_params(k_params, d_model, n_orbitals)
    prepared = prepare_params(params)

    features = jax.random.normal(k_feat, (batch, n_electrons, d_model), jnp.float32)
    electron_coords = jax.random.normal(k_coords, (batch, n_electrons, 3), jnp.float32)
    atom_coords = jnp.zeros((n_atoms, 3), jnp.float32)  # mirrors the buffer; unused (envelope=None)

    orbitals = orbital_network_forward(features, electron_coords, prepared)
    orbitals = jax.block_until_ready(orbitals)

    assert orbitals.shape == (batch, n_electrons, n_orbitals)

    ref_same_precision = _reference_forward_bf16(features, params)
    ref_f32 = _reference_forward_f32(features, params)
    assert jnp.allclose(orbitals, ref_same_precision, atol=1e-3, rtol=1e-3), \
        float(jnp.max(jnp.abs(orbitals - ref_same_precision)))
    assert jnp.allclose(orbitals, ref_f32, atol=3e-2, rtol=3e-2), \
        float(jnp.max(jnp.abs(orbitals - ref_f32)))

    print("KERNEL_OK")
</pallas_src>

<mosaic_0001>
module attributes {stable_mosaic.version = 11 : i64} {
  func.func @_orbital_kernel(%arg0: i32, %arg1: memref<8x128xbf16, #tpu.memory_space<vmem>>, %arg2: memref<128x128xbf16, #tpu.memory_space<vmem>>, %arg3: memref<1x128xf32, #tpu.memory_space<vmem>>, %arg4: memref<128x128xbf16, #tpu.memory_space<vmem>>, %arg5: memref<1x128xf32, #tpu.memory_space<vmem>>, %arg6: memref<8x128xf32, #tpu.memory_space<vmem>>) attributes {dimension_semantics = [#tpu.dimension_semantics<parallel>], iteration_bounds = array<i64: 1>, scalar_prefetch = 0 : i64, scratch_operands = 0 : i64, tpu.core_type = #tpu.core_type<tc>, window_params = [{transform_indices = @transform_0, window_bounds = array<i64: 8, 128>}, {pipeline_mode = #tpu.pipeline_mode<synchronous>, transform_indices = @transform_1, window_bounds = array<i64: 128, 128>}, {pipeline_mode = #tpu.pipeline_mode<synchronous>, transform_indices = @transform_2, window_bounds = array<i64: 1, 128>}, {pipeline_mode = #tpu.pipeline_mode<synchronous>, transform_indices = @transform_3, window_bounds = array<i64: 128, 128>}, {pipeline_mode = #tpu.pipeline_mode<synchronous>, transform_indices = @transform_4, window_bounds = array<i64: 1, 128>}, {transform_indices = @transform_5, window_bounds = array<i64: 8, 128>}]} {
    %c0 = arith.constant 0 : index
    %c0_0 = arith.constant 0 : index
    %0 = vector.load %arg1[%c0, %c0_0] : memref<8x128xbf16, #tpu.memory_space<vmem>>, vector<8x128xbf16>
    %c0_1 = arith.constant 0 : index
    %c0_2 = arith.constant 0 : index
    %1 = vector.load %arg2[%c0_1, %c0_2] : memref<128x128xbf16, #tpu.memory_space<vmem>>, vector<128x128xbf16>
    %cst = arith.constant dense<0.000000e+00> : vector<8x128xf32>
    %2 = tpu.matmul %0, %1, %cst {dimension_numbers = #tpu.dot_dimension_numbers<[1], [0], [0], [1], [0, 0, 1, 1], [], []>} : vector<8x128xbf16>, vector<128x128xbf16>, vector<8x128xf32> -> vector<8x128xf32>
    %c0_3 = arith.constant 0 : index
    %c0_4 = arith.constant 0 : index
    %3 = vector.load %arg3[%c0_3, %c0_4] : memref<1x128xf32, #tpu.memory_space<vmem>>, vector<1x128xf32>
    %4 = vector.broadcast %3 : vector<1x128xf32> to vector<8x128xf32>
    %5 = arith.addf %2, %4 : vector<8x128xf32>
    %cst_5 = arith.constant 5.000000e-01 : f32
    %6 = vector.broadcast %cst_5 : f32 to vector<8x128xf32>
    %7 = arith.mulf %6, %5 : vector<8x128xf32>
    %cst_6 = arith.constant 4.471500e-02 : f32
    %8 = vector.broadcast %cst_6 : f32 to vector<8x128xf32>
    %9 = arith.mulf %8, %5 : vector<8x128xf32>
    %10 = arith.mulf %9, %5 : vector<8x128xf32>
    %11 = arith.mulf %10, %5 : vector<8x128xf32>
    %12 = arith.addf %5, %11 : vector<8x128xf32>
    %cst_7 = arith.constant 0.797884583 : f32
    %13 = vector.broadcast %cst_7 : f32 to vector<8x128xf32>
    %14 = arith.mulf %13, %12 : vector<8x128xf32>
    %15 = math.tanh %14 : vector<8x128xf32>
    %cst_8 = arith.constant 1.000000e+00 : f32
    %16 = vector.broadcast %cst_8 : f32 to vector<8x128xf32>
    %17 = arith.addf %16, %15 : vector<8x128xf32>
    %18 = arith.mulf %7, %17 : vector<8x128xf32>
    %19 = arith.truncf %18 : vector<8x128xf32> to vector<8x128xbf16>
    %c0_9 = arith.constant 0 : index
    %c0_10 = arith.constant 0 : index
    %20 = vector.load %arg4[%c0_9, %c0_10] : memref<128x128xbf16, #tpu.memory_space<vmem>>, vector<128x128xbf16>
    %cst_11 = arith.constant dense<0.000000e+00> : vector<8x128xf32>
    %21 = tpu.matmul %19, %20, %cst_11 {dimension_numbers = #tpu.dot_dimension_numbers<[1], [0], [0], [1], [0, 0, 1, 1], [], []>} : vector<8x128xbf16>, vector<128x128xbf16>, vector<8x128xf32> -> vector<8x128xf32>
    %c0_12 = arith.constant 0 : index
    %c0_13 = arith.constant 0 : index
    %22 = vector.load %arg5[%c0_12, %c0_13] : memref<1x128xf32, #tpu.memory_space<vmem>>, vector<1x128xf32>
    %23 = vector.broadcast %22 : vector<1x128xf32> to vector<8x128xf32>
    %24 = arith.addf %21, %23 : vector<8x128xf32>
    %c0_14 = arith.constant 0 : index
    %c0_15 = arith.constant 0 : index
    %25 = vector.load %arg6[%c0_14, %c0_15] : memref<8x128xf32, #tpu.memory_space<vmem>>, vector<8x128xf32>
    tpu.vector_store %arg6[%c0_14, %c0_15], %24 {strides = array<i32>} : memref<8x128xf32, #tpu.memory_space<vmem>>, vector<8x128xf32>,
    return
  }
  func.func @transform_0(%arg0: i32) -> (i32, i32) {
    %c0_i32 = arith.constant 0 : i32
    %c0_i32_0 = arith.constant 0 : i32
    return %arg0, %c0_i32 : i32, i32
  }
  func.func @transform_1(%arg0: i32) -> (i32, i32) {
    %c0_i32 = arith.constant 0 : i32
    %c0_i32_0 = arith.constant 0 : i32
    %c0_i32_1 = arith.constant 0 : i32
    return %c0_i32, %c0_i32_0 : i32, i32
  }
  func.func @transform_2(%arg0: i32) -> (i32, i32) {
    %c0_i32 = arith.constant 0 : i32
    %c0_i32_0 = arith.constant 0 : i32
    %c0_i32_1 = arith.constant 0 : i32
    return %c0_i32, %c0_i32_0 : i32, i32
  }
  func.func @transform_3(%arg0: i32) -> (i32, i32) {
    %c0_i32 = arith.constant 0 : i32
    %c0_i32_0 = arith.constant 0 : i32
    %c0_i32_1 = arith.constant 0 : i32
    return %c0_i32, %c0_i32_0 : i32, i32
  }
  func.func @transform_4(%arg0: i32) -> (i32, i32) {
    %c0_i32 = arith.constant 0 : i32
    %c0_i32_0 = arith.constant 0 : i32
    %c0_i32_1 = arith.constant 0 : i32
    return %c0_i32, %c0_i32_0 : i32, i32
  }
  func.func @transform_5(%arg0: i32) -> (i32, i32) {
    %c0_i32 = arith.constant 0 : i32
    %c0_i32_0 = arith.constant 0 : i32
    return %arg0, %c0_i32 : i32, i32
  }
}

</mosaic_0001>

<bundles_post_ra>
// kernel: tpu_custom_call.1
= control target key start
LH: loop header
LB: loop body
LE: loop exit
PB: predicated region body
PF: predicated region fallthrough
CT: control target
= control target key end

     0   :  { %10 = vsyncpa [#allocation3], 0  ;;  %s605_s0 = inlined_call_operand.hbm [shape: bf16[8,128], index: 0, kind: input, shape index: {}]   ;;  %s606_s1 = inlined_call_operand.hbm [shape: bf16[128,128], index: 1, kind: input, shape index: {}]   ;;  %s607_s2 = inlined_call_operand.vmem [shape: f32[1,128], index: 2, kind: input, shape index: {}]   ;;  %s608_s3 = inlined_call_operand.hbm [shape: bf16[128,128], index: 3, kind: input, shape index: {}]   ;;  %s609_s4 = inlined_call_operand.vmem [shape: f32[1,128], index: 4, kind: input, shape index: {}]   ;;  %s610_s5 = inlined_call_operand.hbm [shape: f32[8,128], index: 5, kind: output, shape index: {}]  }
   0x1   :  { %11 = vsyncpa [#allocation6], 0 }
   0x2   :  { %12 = vsyncpa [#allocation4], 0  ;;  %s507_s18 = smov [#allocation5]   ;;  %s413_s22 = scalar_lea.hbm %s606_s1, 1024 }
   0x3   :  { %s28_s19 = sshll.u32 %s507_s18, 4  ;;  %p414_p0 = scmp.ne.s32.totalorder %s606_s1, %s413_s22  ;;  %s29_s19 = int_to_ptr.vmem [resolvable:$true] %s28_s19 }
   0x4   :  { %p417_p1 = scmp.lt.u32.totalorder %s413_s22, %s606_s1 }
   0x6   :  { %p419_p2 = pnand %p417_p1, %p414_p0 }
   0x8   :  { %422 = shalt.err (!%p419_p2)
}
   0x9   :  { %s423_s27 = scalar_lea.vmem %s29_s19, 1024  ;;  %p428_p4 = scmp.lt.s32.totalorder %s29_s19, %s29_s19 }
   0xa   :  { %p424_p3 = scmp.ne.s32.totalorder %s29_s19, %s423_s27  ;;  %p429_p5 = scmp.lt.s32.totalorder %s423_s27, %s423_s27 }
   0xc   :  { %p430_p6 = por %p429_p5, %p428_p4 }
   0xe   :  { %p431_p7 = pnand %p430_p6, %p424_p3 }
  0x10   :  { %434 = shalt.err (!%p431_p7)
}
  0x11   :  { %s508_s28 = smov 64   ;;  %s509_s29 = smov 4  }
  0x12   :  { %34 = dma.hbm_to_vmem [thread:$0]  %s606_s1, 1024, %s29_s19, [#allocation6], %s508_s28, %s508_s28, %s509_s29  }
  0x13   :  { %s510_s7 = smov [#allocation2]   ;;  %s511_s9 = smov [#allocation7]  }
  0x14   :  { %s19_s8 = sshll.u32 %s510_s7, 4  ;;  %s42_s10 = sshll.u32 %s511_s9, 4  ;;  %s20_s8 = int_to_ptr.vmem [resolvable:$true] %s19_s8  ;;  %s43_s10 = int_to_ptr.vmem [resolvable:$true] %s42_s10 }
  0x15   :  { %s435_s13 = scalar_lea.hbm %s605_s0, 64 }
  0x16   :  { %p436_p8 = scmp.ne.s32.totalorder %s605_s0, %s435_s13  ;;  %p439_p9 = scmp.lt.u32.totalorder %s435_s13, %s605_s0 }
  0x18   :  { %p441_p10 = pnand %p439_p9, %p436_p8 }
  0x1a   :  { %444 = shalt.err (!%p441_p10)
}
  0x1b   :  { %s445_s1 = scalar_lea.vmem %s20_s8, 64  ;;  %p450_p12 = scmp.lt.s32.totalorder %s20_s8, %s20_s8 }
  0x1c   :  { %p446_p11 = scmp.ne.s32.totalorder %s20_s8, %s445_s1  ;;  %p451_p13 = scmp.lt.s32.totalorder %s445_s1, %s445_s1 }
  0x1e   :  { %p452_p0 = por %p451_p13, %p450_p12 }
  0x20   :  { %p453_p1 = pnand %p452_p0, %p446_p11 }
  0x22   :  { %456 = shalt.err (!%p453_p1)
}
  0x23   :  { %22 = dma.hbm_to_vmem [thread:$0]  %s605_s0, 64, %s20_s8, [#allocation3]  }
  0x24   :  { %s457_s22 = scalar_lea.hbm %s608_s3, 1024 }
  0x25   :  { %p458_p2 = scmp.ne.s32.totalorder %s608_s3, %s457_s22  ;;  %p461_p3 = scmp.lt.u32.totalorder %s457_s22, %s608_s3 }
  0x27   :  { %p463_p4 = pnand %p461_p3, %p458_p2 }
  0x29   :  { %466 = shalt.err (!%p463_p4)
}
  0x2a   :  { %s467_s27 = scalar_lea.vmem %s43_s10, 1024  ;;  %p472_p6 = scmp.lt.s32.totalorder %s43_s10, %s43_s10 }
  0x2b   :  { %p468_p5 = scmp.ne.s32.totalorder %s43_s10, %s467_s27  ;;  %p473_p7 = scmp.lt.s32.totalorder %s467_s27, %s467_s27 }
  0x2d   :  { %p474_p8 = por %p473_p7, %p472_p6 }
  0x2f   :  { %p475_p9 = pnand %p474_p8, %p468_p5 }
  0x31   :  { %478 = shalt.err (!%p475_p9)
}
  0x32   :  { %48 = dma.hbm_to_vmem [thread:$0]  %s608_s3, 1024, %s43_s10, [#allocation6], %s508_s28, %s508_s28, %s509_s29  }
  0x33   :  { %501 = dma.done.wait [#allocation3], 64  }
  0x34   :  { %502 = vsyncadd [#allocation3], 4294967232 }
  0x35   :  { %503 = dma.done.wait [#allocation6], 2048  }
  0x36   :  { %504 = vsyncadd [#allocation6], 4294965248  ;;  %v512_v0 = vmov 0.0   ;;  %vm513_vm0 = vmmov 0   ;;  %v395_v1 = vld [vmem:[#allocation5] sm:$0xff]   ;;  %v396_v2 = vld [vmem:[#allocation5 + $0x8] sm:$0xff]  }
  0x37   :  { %347 = vmatprep.subr.bf16.mxu0 %v512_v0  ;;  %363 = vmatprep.mubr.msk.bf16.mxu0 %vm513_vm0, %v512_v0  ;;  %v397_v3 = vld [vmem:[#allocation5 + $0x10] sm:$0xff]   ;;  %v398_v4 = vld [vmem:[#allocation5 + $0x18] sm:$0xff]   ;;  %v403_v5 = vld [vmem:[#allocation7] sm:$0xff]  }
  0x38   :  { %367 = vmatprep.subr.bf16.mxu1 %v512_v0  ;;  %383 = vmatprep.mubr.msk.bf16.mxu1 %vm513_vm0, %v512_v0  ;;  %v399_v6 = vld [vmem:[#allocation5 + $0x20] sm:$0xff]   ;;  %v400_v7 = vld [vmem:[#allocation5 + $0x28] sm:$0xff]   ;;  %v401_v8 = vld [vmem:[#allocation5 + $0x30] sm:$0xff]  }
  0x39   :  { %348 = vmatpush3.bf16.msra.mxu0 %v395_v1  ;;  %368 = vmatpush3.bf16.msra.mxu1 %v403_v5  ;;  %v402_v9 = vld [vmem:[#allocation5 + $0x38] sm:$0xff]   ;;  %v404_v11 = vld [vmem:[#allocation7 + $0x8] sm:$0xff]   ;;  %v405_v12 = vld [vmem:[#allocation7 + $0x10] sm:$0xff]  }
  0x3a   :  { %349 = vmatprep.subr.bf16.mxu0 %v512_v0  ;;  %369 = vmatprep.subr.bf16.mxu1 %v512_v0  ;;  %v61_v10 = vld [vmem:[#allocation2] sm:$0xf]  ;;  %v407_v14 = vld [vmem:[#allocation7 + $0x20] sm:$0xff]   ;;  %v408_v15 = vld [vmem:[#allocation7 + $0x28] sm:$0xff]  }
  0x3b   :  { %v406_v13 = vld [vmem:[#allocation7 + $0x18] sm:$0xff]   ;;  %v409_v16 = vld [vmem:[#allocation7 + $0x30] sm:$0xff]  }
  0x3c   :  { %v410_v17 = vld [vmem:[#allocation7 + $0x38] sm:$0xff]  }
  0x3d   :  { %350 = vmatpush3.bf16.msra.mxu0 %v396_v2  ;;  %370 = vmatpush3.bf16.msra.mxu1 %v404_v11  ;;  %v311_v18 = vld [vmem:[%s607_s2] ss:$0 sm:$0xff]  ;;  %s514_s2 = smov [#allocation8]  }
  0x3e   :  { %351 = vmatprep.subr.bf16.mxu0 %v512_v0  ;;  %371 = vmatprep.subr.bf16.mxu1 %v512_v0  ;;  %v320_v34 = vld [vmem:[%s609_s4] ss:$0 sm:$0xff]  ;;  %s301_s7 = sshll.u32 %s514_s2, 4  ;;  %s302_s7 = int_to_ptr.vmem [resolvable:$true] %s301_s7 }
  0x3f   :  { %s479_s8 = scalar_lea.vmem %s302_s7, 128  ;;  %p484_p11 = scmp.lt.s32.totalorder %s302_s7, %s302_s7 }
  0x40   :  { %p480_p10 = scmp.ne.s32.totalorder %s302_s7, %s479_s8  ;;  %p485_p12 = scmp.lt.s32.totalorder %s479_s8, %s479_s8 }
  0x41   :  { %352 = vmatpush3.bf16.msra.mxu0 %v397_v3  ;;  %372 = vmatpush3.bf16.msra.mxu1 %v405_v12 }
  0x42   :  { %353 = vmatprep.subr.bf16.mxu0 %v512_v0  ;;  %373 = vmatprep.subr.bf16.mxu1 %v512_v0  ;;  %p486_p13 = por %p485_p12, %p484_p11 }
  0x44   :  { %p487_p0 = pnand %p486_p13, %p480_p10 }
  0x45   :  { %354 = vmatpush3.bf16.msra.mxu0 %v398_v4  ;;  %374 = vmatpush3.bf16.msra.mxu1 %v406_v13 }
  0x46   :  { %355 = vmatprep.subr.bf16.mxu0 %v512_v0  ;;  %375 = vmatprep.subr.bf16.mxu1 %v512_v0 }
  0x49   :  { %356 = vmatpush3.bf16.msra.mxu0 %v399_v6  ;;  %376 = vmatpush3.bf16.msra.mxu1 %v407_v14 }
  0x4a   :  { %357 = vmatprep.subr.bf16.mxu0 %v512_v0  ;;  %377 = vmatprep.subr.bf16.mxu1 %v512_v0 }
  0x4d   :  { %358 = vmatpush3.bf16.msra.mxu0 %v400_v7  ;;  %378 = vmatpush3.bf16.msra.mxu1 %v408_v15 }
  0x4e   :  { %359 = vmatprep.subr.bf16.mxu0 %v512_v0  ;;  %379 = vmatprep.subr.bf16.mxu1 %v512_v0 }
  0x51   :  { %360 = vmatpush3.bf16.msra.mxu0 %v401_v8  ;;  %380 = vmatpush3.bf16.msra.mxu1 %v409_v16 }
  0x52   :  { %361 = vmatprep.subr.bf16.mxu0 %v512_v0  ;;  %381 = vmatprep.subr.bf16.mxu1 %v512_v0 }
  0x55   :  { %362 = vmatpush3.bf16.msra.mxu0 %v402_v9  ;;  %382 = vmatpush3.bf16.msra.mxu1 %v410_v17 }
  0x58   :  { %364 = vmatmul.mubr.bf16.vlgmr.msra.gmra.mrb[0].mxu0 %v61_v10 }
 0x12b   :  { %v167_v19 = vpop.f32.mrb[0].mxu0 }
 0x12c   :  { %v168_v20 = vadd.f32 %v311_v18, %v167_v19  ;;  %v365_v21 = vpop.f32.mrb[1].mxu0 }
 0x12d   :  { %v170_v22 = vpop.f32.mrb[2].mxu0 }
 0x12e   :  { %v174_v23 = vmul.f32 0.044715, %v168_v20  ;;  %v366_v24 = vpop.f32.mrb[3].mxu0  ;;  %v173_v30 = vmul.f32 0.5, %v168_v20 }
 0x130   :  { %v175_v25 = vmul.f32 %v174_v23, %v168_v20 }
 0x132   :  { %v176_v26 = vmul.f32 %v175_v25, %v168_v20 }
 0x134   :  { %v177_v27 = vadd.f32 %v176_v26, %v168_v20 }
 0x136   :  { %v178_v28 = vmul.f32 0.7978846, %v177_v27 }
 0x138   :  { %411 = vtanh.f32 %v178_v28 }
 0x142   :  { %v412_v29 = vpop.eup %411 }
 0x143   :  { %v180_v31 = vadd.f32 1.0, %v412_v29 }
 0x145   :  { %v181_v32 = vmul.f32 %v180_v31, %v173_v30 }
 0x147   :  { %v182_v33 = vpack.c.bf16 %v181_v32, %v181_v32 }
 0x149   :  { %384 = vmatmul.mubr.bf16.vlgmr.msra.gmra.mrb[0].mxu1 %v182_v33 }
 0x21c   :  { %v288_v35 = vpop.f32.mrb[0].mxu1 }
 0x21d   :  { %v289_v36 = vadd.f32 %v320_v34, %v288_v35  ;;  %v385_v37 = vpop.f32.mrb[1].mxu1 }
 0x21e   :  { %v291_v38 = vpop.f32.mrb[2].mxu1 }
 0x21f   :  { %294 = vst [vmem:[#allocation8] sm:$0xff] %v289_v36  ;;  %v386_v39 = vpop.f32.mrb[3].mxu1 }
 0x220   :  { %490 = shalt.err (!%p487_p0)
}
 0x221   :  { %s491_s4 = scalar_lea.hbm %s610_s5, 128 }
 0x222   :  { %p492_p1 = scmp.ne.s32.totalorder %s610_s5, %s491_s4  ;;  %p495_p2 = scmp.lt.u32.totalorder %s491_s4, %s610_s5 }
 0x224   :  { %p497_p3 = pnand %p495_p2, %p492_p1 }
 0x226   :  { %500 = shalt.err (!%p497_p3)
}
 0x227   :  { %304 = dma.vmem_to_hbm [thread:$0]  %s302_s7, 128, %s610_s5, [#allocation4]  }
 0x228   :  { %505 = dma.done.wait [#allocation4], 128  }
 0x229   :  { %506 = vsyncadd [#allocation4], 4294967168 }
 0x22a   :  { %308 = vsyncpa [#allocation3], 1 }
 0x22b   :  { %309 = vsyncpa [#allocation6], 1 }
 0x22c   :  { %310 = vsyncpa [#allocation4], 1 }

</bundles_post_ra>
